<compile_context>
chip_gen: v5e
topology: v5e:2x2
jax: 0.10.0
libtpu: 0.0.40
codegen_flags: <defaults>
</compile_context>

<pallas_src>
import functools

import jax
import jax.numpy as jnp
from jax.experimental import pallas as pl
from jax.experimental.pallas import tpu as pltpu


def _round_up(a, b):
    return (a + b - 1) // b * b


# ---------------------------------------------------------------------------
# Fused kernel: one (TM, D) @ (D, N_tot) matmul, then
#   - masked softmax over the 128-lane padded hidden block            -> h_ref
#   - grouped softmax over n_obs lane-aligned (TM, SH_pad) slabs      -> e_ref
# Both outputs are stored lane-dense (padded widths, multiples of 128).
# ---------------------------------------------------------------------------
def _fused_kernel(x_ref, w_ref, b_ref, h_ref, e_ref, *,
                  inv_t, n_hidden, n_obs, h_pad, sh_pad):
    logits = jnp.dot(x_ref[...], w_ref[...], preferred_element_type=jnp.float32)
    logits = (logits + b_ref[...]) * inv_t          # constant 1/T folded in
    tm = logits.shape[0]

    # --- hidden softmax on the full padded 128-lane block ---------------------
    hl = logits[:, :h_pad]                                   # lane-aligned, full width
    col = jax.lax.broadcasted_iota(jnp.int32, (tm, h_pad), 1)
    hl = jnp.where(col < n_hidden, hl, -jnp.inf)             # mask padded columns
    hm = jnp.max(hl, axis=-1, keepdims=True)
    he = jnp.exp(hl - hm)
    hs = jnp.sum(he, axis=-1, keepdims=True)
    h_ref[...] = he * pl.reciprocal(hs, approx=True)         # padded cols -> 0

    # --- emission grouped softmax: elementwise across n_obs aligned slabs -----
    slabs = [logits[:, h_pad + o * sh_pad: h_pad + (o + 1) * sh_pad]
             for o in range(n_obs)]
    em = slabs[0]
    for o in range(1, n_obs):
        em = jnp.maximum(em, slabs[o])
    exps = [jnp.exp(s - em) for s in slabs]
    es = exps[0]
    for o in range(1, n_obs):
        es = es + exps[o]
    inv = pl.reciprocal(es, approx=True)
    for o in range(n_obs):
        e_ref[:, o * sh_pad:(o + 1) * sh_pad] = exps[o] * inv  # full-width stores


# ---------------------------------------------------------------------------
# One-time parameter packing (hoisted out of the per-call forward).
# ---------------------------------------------------------------------------
def pack_params(params, *, n_hidden, n_src, n_obs, matmul_dtype=jnp.bfloat16):
    w_h = params["hidden_w"].astype(jnp.float32)      # (D, H)
    b_h = params["hidden_b"].astype(jnp.float32)      # (1, H)
    w_e = params["emiss_w"].astype(jnp.float32)       # (n_src, D, H*O)
    b_e = params["emiss_b"].astype(jnp.float32)       # (n_src, 1, H*O)
    D = w_h.shape[0]
    sh = n_src * n_hidden
    h_pad = _round_up(n_hidden, 128)
    sh_pad = _round_up(sh, 128)

    # Emission columns obs-major: col(o, s, h) = o*sh_pad + s*n_hidden + h,
    # each obs slab zero-padded to a 128-lane multiple.
    w_e4 = w_e.reshape(n_src, D, n_hidden, n_obs)               # (S, D, H, O)
    w_e_slab = jnp.transpose(w_e4, (1, 3, 0, 2)).reshape(D, n_obs, sh)
    w_e_slab = jnp.pad(w_e_slab, ((0, 0), (0, 0), (0, sh_pad - sh)))
    b_e3 = b_e.reshape(n_src, n_hidden, n_obs)
    b_e_slab = jnp.transpose(b_e3, (2, 0, 1)).reshape(1, n_obs, sh)
    b_e_slab = jnp.pad(b_e_slab, ((0, 0), (0, 0), (0, sh_pad - sh)))

    w_all = jnp.concatenate(
        [jnp.pad(w_h, ((0, 0), (0, h_pad - n_hidden))),
         w_e_slab.reshape(D, n_obs * sh_pad)], axis=1)           # (D, N_tot)
    b_all = jnp.concatenate(
        [jnp.pad(b_h, ((0, 0), (0, h_pad - n_hidden))),
         b_e_slab.reshape(1, n_obs * sh_pad)], axis=1)           # (1, N_tot)

    return {
        "w_all": w_all.astype(matmul_dtype),   # bf16 (default) MXU inputs
        "b_all": b_all,                        # bias stays f32, added post-MXU
        "n_hidden": n_hidden, "n_src": n_src, "n_obs": n_obs,
        "h_pad": h_pad, "sh_pad": sh_pad, "d_emb": D,
    }


def _vmem_config():
    """(budget_bytes, vmem_limit_bytes) per TPU generation."""
    cap = None
    try:
        cap = int(pltpu.get_tpu_info().vmem_capacity_bytes)
    except Exception:
        cap = None
    if cap is not None and cap > (64 << 20):
        # v5e / v6e: 128 MiB physical VMEM -> bigger tiles, explicit scoped limit.
        return 56 << 20, 80 << 20
    # v7x (64 MiB per TensorCore) or unknown: stay conservative.
    return 36 << 20, 48 << 20


# ---------------------------------------------------------------------------
# Forward pass. embs: (B, S, D) float32. Returns (nn_hidden_states, nn_emiss).
# ---------------------------------------------------------------------------
def neural_module_forward(embs, packed, *, temperature=1.0):
    B, S, D = embs.shape
    M = B * S
    n_hidden = packed["n_hidden"]
    n_src = packed["n_src"]
    n_obs = packed["n_obs"]
    h_pad = packed["h_pad"]
    sh_pad = packed["sh_pad"]
    w_all = packed["w_all"]
    b_all = packed["b_all"]
    e_tot = n_obs * sh_pad
    n_tot = h_pad + e_tot
    assert w_all.shape == (D, n_tot)

    x = embs.reshape(M, D).astype(w_all.dtype)   # bf16 (default) or f32

    budget, vmem_limit = _vmem_config()
    itemsize = jnp.dtype(w_all.dtype).itemsize
    align = 16 if itemsize < 4 else 8            # bf16 sublane packing

    def est_bytes(t):
        # Double-buffered x/outputs, weights, and the in-kernel f32 temporaries
        # (logits, exp slabs, max/sum/inv), with a 25% fudge factor.
        return int(1.25 * (
            2 * t * D * itemsize                 # x (double-buffered)
            + 2 * D * n_tot * itemsize           # packed weights
            + 2 * n_tot * 4                      # bias
            + 2 * t * (h_pad + e_tot) * 4        # outputs (double-buffered)
            + t * n_tot * 4                      # logits
            + t * e_tot * 4                      # exp slabs
            + t * (3 * sh_pad + 3 * h_pad) * 4   # max / sum / reciprocal temps
        ))

    tm_cap = max(align, _round_up(M, align))
    TM = align
    for cand in (4096, 2048, 1024, 512, 256, 128, 64, 32, 16, 8):
        if cand % align:
            continue
        if cand <= tm_cap and est_bytes(cand) <= budget:
            TM = cand
            break
    # Prefer a >=2-tile grid so the "parallel" axis can shard across TensorCores.
    if pl.cdiv(M, TM) == 1 and TM >= 2 * align:
        TM //= 2
    grid = (pl.cdiv(M, TM),)   # no explicit pad of x; boundary stores are masked

    kernel = functools.partial(
        _fused_kernel, inv_t=float(1.0 / temperature),
        n_hidden=n_hidden, n_obs=n_obs, h_pad=h_pad, sh_pad=sh_pad)

    def call(single_buffer_weights):
        const_kwargs = ({"pipeline_mode": pl.Buffered(1)}
                        if single_buffer_weights else {})
        return pl.pallas_call(
            kernel,
            out_shape=(jax.ShapeDtypeStruct((M, h_pad), jnp.float32),
                       jax.ShapeDtypeStruct((M, e_tot), jnp.float32)),
            grid=grid,
            in_specs=[
                pl.BlockSpec((TM, D), lambda i: (i, 0)),
                pl.BlockSpec((D, n_tot), lambda i: (0, 0), **const_kwargs),
                pl.BlockSpec((1, n_tot), lambda i: (0, 0), **const_kwargs),
            ],
            out_specs=[
                pl.BlockSpec((TM, h_pad), lambda i: (i, 0)),   # lane-dense
                pl.BlockSpec((TM, e_tot), lambda i: (i, 0)),   # lane-dense
            ],
            compiler_params=pltpu.CompilerParams(
                dimension_semantics=("parallel",),
                vmem_limit_bytes=vmem_limit),
        )(x, w_all, b_all)

    try:
        hidden_p, emiss_p = call(True)
    except Exception:
        # Fallback for jax versions whose TPU lowering rejects pl.Buffered(1)
        # on pallas_call BlockSpecs; semantics are identical.
        hidden_p, emiss_p = call(False)

    nn_hidden_states = hidden_p[:, :n_hidden].reshape(B, S, n_hidden)
    # Columns are (obs, src, hidden) within padded obs slabs: slice the real
    # columns and permute once in the wrapper (cheap on the small output).
    e = emiss_p.reshape(M, n_obs, sh_pad)[:, :, :n_src * n_hidden]
    nn_emiss = e.reshape(B, S, n_obs, n_src, n_hidden).transpose(0, 1, 3, 4, 2)
    return nn_hidden_states, nn_emiss


def init_params(key, d_emb, n_hidden, n_src, n_obs):
    """Deterministic synthetic init (xavier-uniform-ish); shapes match the torch module."""
    k1, k2, k3, k4 = jax.random.split(key, 4)
    HO = n_hidden * n_obs
    hidden_w = jax.random.uniform(
        k1, (d_emb, n_hidden), jnp.float32, -1.0, 1.0
    ) * jnp.sqrt(6.0 / (d_emb + n_hidden))
    hidden_b = jax.random.uniform(k2, (1, n_hidden), jnp.float32, -0.1, 0.1)
    gain = jnp.sqrt(2.0)  # nn.init.calculate_gain('relu')
    emiss_w = jax.random.uniform(
        k3, (n_src, d_emb, HO), jnp.float32, -1.0, 1.0
    ) * (gain * jnp.sqrt(6.0 / (d_emb + HO)))
    emiss_b = jax.random.uniform(k4, (n_src, 1, HO), jnp.float32, -0.1, 0.1)
    return {
        "hidden_w": hidden_w,
        "hidden_b": hidden_b,
        "emiss_w": emiss_w,
        "emiss_b": emiss_b,
    }


def _reference(embs, params, *, n_hidden, n_src, n_obs, temperature=1.0):
    """Plain-JAX reference mirroring the PyTorch forward."""
    B, S, D = embs.shape
    h = embs @ params["hidden_w"] + params["hidden_b"][0]
    hidden = jax.nn.softmax(h / temperature, axis=-1)
    per_src = []
    for s in range(n_src):
        l = (embs @ params["emiss_w"][s] + params["emiss_b"][s, 0]).reshape(
            B, S, n_hidden, n_obs
        )
        per_src.append(jax.nn.softmax(l / temperature, axis=-1))
    emiss = jnp.stack(per_src).transpose(1, 2, 0, 3, 4)
    return hidden, emiss


if __name__ == "__main__":
    # Small shapes consistent with the module's forward: embs (batch, seq, d_emb).
    B, S, D = 2, 8, 32
    n_hidden, n_src, n_obs = 8, 3, 4
    temperature = 1.0

    key = jax.random.PRNGKey(0)
    k_emb, k_param = jax.random.split(key)
    embs = jax.random.normal(k_emb, (B, S, D), jnp.float32)
    params = init_params(k_param, D, n_hidden, n_src, n_obs)

    ref_hidden, ref_emiss = _reference(
        embs, params, n_hidden=n_hidden, n_src=n_src, n_obs=n_obs,
        temperature=temperature,
    )

    # Default path: bf16 MXU inputs, f32 accumulation + f32 softmax math.
    packed_bf16 = pack_params(
        params, n_hidden=n_hidden, n_src=n_src, n_obs=n_obs,
        matmul_dtype=jnp.bfloat16)
    nn_hidden_states, nn_emiss = neural_module_forward(
        embs, packed_bf16, temperature=temperature)
    jax.block_until_ready((nn_hidden_states, nn_emiss))
    assert nn_hidden_states.shape == (B, S, n_hidden)
    assert nn_emiss.shape == (B, S, n_src, n_hidden, n_obs)
    assert jnp.allclose(nn_hidden_states, ref_hidden, atol=2e-2)
    assert jnp.allclose(nn_emiss, ref_emiss, atol=2e-2)

    # f32 MXU path: tighter check (approx reciprocal bounds the residual error).
    packed_f32 = pack_params(
        params, n_hidden=n_hidden, n_src=n_src, n_obs=n_obs,
        matmul_dtype=jnp.float32)
    h_f32, e_f32 = neural_module_forward(embs, packed_f32, temperature=temperature)
    jax.block_until_ready((h_f32, e_f32))
    assert jnp.allclose(h_f32, ref_hidden, atol=5e-3)
    assert jnp.allclose(e_f32, ref_emiss, atol=5e-3)

    print("KERNEL_OK")
</pallas_src>

<mosaic_0001>
module attributes {stable_mosaic.version = 11 : i64} {
  func.func @_fused_kernel(%arg0: i32, %arg1: memref<16x32xbf16, #tpu.memory_space<vmem>>, %arg2: memref<32x640xbf16, #tpu.memory_space<vmem>>, %arg3: memref<1x640xf32, #tpu.memory_space<vmem>>, %arg4: memref<16x128xf32, #tpu.memory_space<vmem>>, %arg5: memref<16x512xf32, #tpu.memory_space<vmem>>) attributes {dimension_semantics = [#tpu.dimension_semantics<parallel>], iteration_bounds = array<i64: 1>, scalar_prefetch = 0 : i64, scratch_operands = 0 : i64, tpu.core_type = #tpu.core_type<tc>, window_params = [{transform_indices = @transform_0, window_bounds = array<i64: 16, 32>}, {pipeline_mode = #tpu.pipeline_mode<synchronous>, transform_indices = @transform_1, window_bounds = array<i64: 32, 640>}, {pipeline_mode = #tpu.pipeline_mode<synchronous>, transform_indices = @transform_2, window_bounds = array<i64: 1, 640>}, {transform_indices = @transform_3, window_bounds = array<i64: 16, 128>}, {transform_indices = @transform_4, window_bounds = array<i64: 16, 512>}]} {
    %c0 = arith.constant 0 : index
    %c0_0 = arith.constant 0 : index
    %0 = vector.load %arg1[%c0, %c0_0] : memref<16x32xbf16, #tpu.memory_space<vmem>>, vector<16x32xbf16>
    %c0_1 = arith.constant 0 : index
    %c0_2 = arith.constant 0 : index
    %1 = vector.load %arg2[%c0_1, %c0_2] : memref<32x640xbf16, #tpu.memory_space<vmem>>, vector<32x640xbf16>
    %cst = arith.constant dense<0.000000e+00> : vector<16x640xf32>
    %2 = tpu.matmul %0, %1, %cst {dimension_numbers = #tpu.dot_dimension_numbers<[1], [0], [0], [1], [0, 0, 1, 1], [], []>} : vector<16x32xbf16>, vector<32x640xbf16>, vector<16x640xf32> -> vector<16x640xf32>
    %c0_3 = arith.constant 0 : index
    %c0_4 = arith.constant 0 : index
    %3 = vector.load %arg3[%c0_3, %c0_4] : memref<1x640xf32, #tpu.memory_space<vmem>>, vector<1x640xf32>
    %4 = vector.broadcast %3 : vector<1x640xf32> to vector<16x640xf32>
    %5 = arith.addf %2, %4 : vector<16x640xf32>
    %cst_5 = arith.constant 1.000000e+00 : f32
    %6 = vector.broadcast %cst_5 : f32 to vector<16x640xf32>
    %7 = arith.mulf %5, %6 : vector<16x640xf32>
    %8 = vector.extract_strided_slice %7 {offsets = [0, 0], sizes = [16, 128], strides = [1, 1]} : vector<16x640xf32> to vector<16x128xf32>
    %9 = tpu.iota {dimensions = array<i32: 1>} : vector<16x128xi32>
    %c8_i32 = arith.constant 8 : i32
    %10 = vector.broadcast %c8_i32 : i32 to vector<16x128xi32>
    %11 = arith.cmpi slt, %9, %10 : vector<16x128xi32>
    %cst_6 = arith.constant 0xFF800000 : f32
    %12 = vector.broadcast %cst_6 : f32 to vector<16x128xf32>
    %13 = arith.select %11, %8, %12 : vector<16x128xi1>, vector<16x128xf32>
    %cst_7 = arith.constant dense<0xFF800000> : vector<16xf32>
    %14 = vector.multi_reduction <maximumf>, %13, %cst_7 [1] : vector<16x128xf32> to vector<16xf32>
    %15 = vector.shape_cast %14 : vector<16xf32> to vector<16x1xf32>
    %16 = vector.broadcast %15 : vector<16x1xf32> to vector<16x128xf32>
    %17 = arith.subf %13, %16 : vector<16x128xf32>
    %18 = math.exp %17 : vector<16x128xf32>
    %cst_8 = arith.constant dense<0.000000e+00> : vector<16xf32>
    %19 = vector.multi_reduction <add>, %18, %cst_8 [1] : vector<16x128xf32> to vector<16xf32>
    %20 = vector.shape_cast %19 : vector<16xf32> to vector<16x1xf32>
    %21 = tpu.reciprocal %20 {approx = true} : vector<16x1xf32> -> vector<16x1xf32>
    %22 = vector.broadcast %21 : vector<16x1xf32> to vector<16x128xf32>
    %23 = arith.mulf %18, %22 : vector<16x128xf32>
    %c0_9 = arith.constant 0 : index
    %c0_10 = arith.constant 0 : index
    %24 = vector.load %arg4[%c0_9, %c0_10] : memref<16x128xf32, #tpu.memory_space<vmem>>, vector<16x128xf32>
    tpu.vector_store %arg4[%c0_9, %c0_10], %23 {strides = array<i32>} : memref<16x128xf32, #tpu.memory_space<vmem>>, vector<16x128xf32>,
    %25 = vector.extract_strided_slice %7 {offsets = [0, 128], sizes = [16, 128], strides = [1, 1]} : vector<16x640xf32> to vector<16x128xf32>
    %26 = vector.extract_strided_slice %7 {offsets = [0, 256], sizes = [16, 128], strides = [1, 1]} : vector<16x640xf32> to vector<16x128xf32>
    %27 = vector.extract_strided_slice %7 {offsets = [0, 384], sizes = [16, 128], strides = [1, 1]} : vector<16x640xf32> to vector<16x128xf32>
    %28 = vector.extract_strided_slice %7 {offsets = [0, 512], sizes = [16, 128], strides = [1, 1]} : vector<16x640xf32> to vector<16x128xf32>
    %29 = arith.maximumf %25, %26 : vector<16x128xf32>
    %30 = arith.maximumf %29, %27 : vector<16x128xf32>
    %31 = arith.maximumf %30, %28 : vector<16x128xf32>
    %32 = arith.subf %25, %31 : vector<16x128xf32>
    %33 = math.exp %32 : vector<16x128xf32>
    %34 = arith.subf %26, %31 : vector<16x128xf32>
    %35 = math.exp %34 : vector<16x128xf32>
    %36 = arith.subf %27, %31 : vector<16x128xf32>
    %37 = math.exp %36 : vector<16x128xf32>
    %38 = arith.subf %28, %31 : vector<16x128xf32>
    %39 = math.exp %38 : vector<16x128xf32>
    %40 = arith.addf %33, %35 : vector<16x128xf32>
    %41 = arith.addf %40, %37 : vector<16x128xf32>
    %42 = arith.addf %41, %39 : vector<16x128xf32>
    %43 = tpu.reciprocal %42 {approx = true} : vector<16x128xf32> -> vector<16x128xf32>
    %44 = arith.mulf %33, %43 : vector<16x128xf32>
    %c0_11 = arith.constant 0 : index
    %c0_12 = arith.constant 0 : index
    %45 = vector.load %arg5[%c0_11, %c0_12] : memref<16x512xf32, #tpu.memory_space<vmem>>, vector<16x128xf32>
    tpu.vector_store %arg5[%c0_11, %c0_12], %44 {strides = array<i32>} : memref<16x512xf32, #tpu.memory_space<vmem>>, vector<16x128xf32>,
    %46 = arith.mulf %35, %43 : vector<16x128xf32>
    %c0_13 = arith.constant 0 : index
    %c128 = arith.constant 128 : index
    %47 = vector.load %arg5[%c0_13, %c128] : memref<16x512xf32, #tpu.memory_space<vmem>>, vector<16x128xf32>
    tpu.vector_store %arg5[%c0_13, %c128], %46 {strides = array<i32>} : memref<16x512xf32, #tpu.memory_space<vmem>>, vector<16x128xf32>,
    %48 = arith.mulf %37, %43 : vector<16x128xf32>
    %c0_14 = arith.constant 0 : index
    %c256 = arith.constant 256 : index
    %49 = vector.load %arg5[%c0_14, %c256] : memref<16x512xf32, #tpu.memory_space<vmem>>, vector<16x128xf32>
    tpu.vector_store %arg5[%c0_14, %c256], %48 {strides = array<i32>} : memref<16x512xf32, #tpu.memory_space<vmem>>, vector<16x128xf32>,
    %50 = arith.mulf %39, %43 : vector<16x128xf32>
    %c0_15 = arith.constant 0 : index
    %c384 = arith.constant 384 : index
    %51 = vector.load %arg5[%c0_15, %c384] : memref<16x512xf32, #tpu.memory_space<vmem>>, vector<16x128xf32>
    tpu.vector_store %arg5[%c0_15, %c384], %50 {strides = array<i32>} : memref<16x512xf32, #tpu.memory_space<vmem>>, vector<16x128xf32>,
    return
  }
  func.func @transform_0(%arg0: i32) -> (i32, i32) {
    %c0_i32 = arith.constant 0 : i32
    %c0_i32_0 = arith.constant 0 : i32
    return %arg0, %c0_i32 : i32, i32
  }
  func.func @transform_1(%arg0: i32) -> (i32, i32) {
    %c0_i32 = arith.constant 0 : i32
    %c0_i32_0 = arith.constant 0 : i32
    %c0_i32_1 = arith.constant 0 : i32
    return %c0_i32, %c0_i32_0 : i32, i32
  }
  func.func @transform_2(%arg0: i32) -> (i32, i32) {
    %c0_i32 = arith.constant 0 : i32
    %c0_i32_0 = arith.constant 0 : i32
    %c0_i32_1 = arith.constant 0 : i32
    return %c0_i32, %c0_i32_0 : i32, i32
  }
  func.func @transform_3(%arg0: i32) -> (i32, i32) {
    %c0_i32 = arith.constant 0 : i32
    %c0_i32_0 = arith.constant 0 : i32
    return %arg0, %c0_i32 : i32, i32
  }
  func.func @transform_4(%arg0: i32) -> (i32, i32) {
    %c0_i32 = arith.constant 0 : i32
    %c0_i32_0 = arith.constant 0 : i32
    return %arg0, %c0_i32 : i32, i32
  }
}

module attributes {stable_mosaic.version = 11 : i64} {
  func.func @_fused_kernel(%arg0: i32, %arg1: memref<16x32xbf16, #tpu.memory_space<vmem>>, %arg2: memref<32x640xbf16, #tpu.memory_space<vmem>>, %arg3: memref<1x640xf32, #tpu.memory_space<vmem>>, %arg4: memref<16x128xf32, #tpu.memory_space<vmem>>, %arg5: memref<16x512xf32, #tpu.memory_space<vmem>>) attributes {dimension_semantics = [#tpu.dimension_semantics<parallel>], iteration_bounds = array<i64: 1>, scalar_prefetch = 0 : i64, scratch_operands = 0 : i64, tpu.core_type = #tpu.core_type<tc>, window_params = [{transform_indices = @transform_0, window_bounds = array<i64: 16, 32>}, {pipeline_mode = #tpu.pipeline_mode<synchronous>, transform_indices = @transform_1, window_bounds = array<i64: 32, 640>}, {pipeline_mode = #tpu.pipeline_mode<synchronous>, transform_indices = @transform_2, window_bounds = array<i64: 1, 640>}, {transform_indices = @transform_3, window_bounds = array<i64: 16, 128>}, {transform_indices = @transform_4, window_bounds = array<i64: 16, 512>}]} {
    %c0 = arith.constant 0 : index
    %c0_0 = arith.constant 0 : index
    %0 = vector.load %arg1[%c0, %c0_0] : memref<16x32xbf16, #tpu.memory_space<vmem>>, vector<16x32xbf16>
    %c0_1 = arith.constant 0 : index
    %c0_2 = arith.constant 0 : index
    %1 = vector.load %arg2[%c0_1, %c0_2] : memref<32x640xbf16, #tpu.memory_space<vmem>>, vector<32x640xbf16>
    %cst = arith.constant dense<0.000000e+00> : vector<16x640xf32>
    %2 = tpu.matmul %0, %1, %cst {dimension_numbers = #tpu.dot_dimension_numbers<[1], [0], [0], [1], [0, 0, 1, 1], [], []>} : vector<16x32xbf16>, vector<32x640xbf16>, vector<16x640xf32> -> vector<16x640xf32>
    %c0_3 = arith.constant 0 : index
    %c0_4 = arith.constant 0 : index
    %3 = vector.load %arg3[%c0_3, %c0_4] : memref<1x640xf32, #tpu.memory_space<vmem>>, vector<1x640xf32>
    %4 = vector.broadcast %3 : vector<1x640xf32> to vector<16x640xf32>
    %5 = arith.addf %2, %4 : vector<16x640xf32>
    %cst_5 = arith.constant 1.000000e+00 : f32
    %6 = vector.broadcast %cst_5 : f32 to vector<16x640xf32>
    %7 = arith.mulf %5, %6 : vector<16x640xf32>
    %8 = vector.extract_strided_slice %7 {offsets = [0, 0], sizes = [16, 128], strides = [1, 1]} : vector<16x640xf32> to vector<16x128xf32>
    %9 = tpu.iota {dimensions = array<i32: 1>} : vector<16x128xi32>
    %c8_i32 = arith.constant 8 : i32
    %10 = vector.broadcast %c8_i32 : i32 to vector<16x128xi32>
    %11 = arith.cmpi slt, %9, %10 : vector<16x128xi32>
    %cst_6 = arith.constant 0xFF800000 : f32
    %12 = vector.broadcast %cst_6 : f32 to vector<16x128xf32>
    %13 = arith.select %11, %8, %12 : vector<16x128xi1>, vector<16x128xf32>
    %cst_7 = arith.constant dense<0xFF800000> : vector<16xf32>
    %14 = vector.multi_reduction <maximumf>, %13, %cst_7 [1] : vector<16x128xf32> to vector<16xf32>
    %15 = vector.shape_cast %14 : vector<16xf32> to vector<16x1xf32>
    %16 = vector.broadcast %15 : vector<16x1xf32> to vector<16x128xf32>
    %17 = arith.subf %13, %16 : vector<16x128xf32>
    %18 = math.exp %17 : vector<16x128xf32>
    %cst_8 = arith.constant dense<0.000000e+00> : vector<16xf32>
    %19 = vector.multi_reduction <add>, %18, %cst_8 [1] : vector<16x128xf32> to vector<16xf32>
    %20 = vector.shape_cast %19 : vector<16xf32> to vector<16x1xf32>
    %21 = tpu.reciprocal %20 {approx = true} : vector<16x1xf32> -> vector<16x1xf32>
    %22 = vector.broadcast %21 : vector<16x1xf32> to vector<16x128xf32>
    %23 = arith.mulf %18, %22 : vector<16x128xf32>
    %c0_9 = arith.constant 0 : index
    %c0_10 = arith.constant 0 : index
    %24 = vector.load %arg4[%c0_9, %c0_10] : memref<16x128xf32, #tpu.memory_space<vmem>>, vector<16x128xf32>
    tpu.vector_store %arg4[%c0_9, %c0_10], %23 {strides = array<i32>} : memref<16x128xf32, #tpu.memory_space<vmem>>, vector<16x128xf32>,
    %25 = vector.extract_strided_slice %7 {offsets = [0, 128], sizes = [16, 128], strides = [1, 1]} : vector<16x640xf32> to vector<16x128xf32>
    %26 = vector.extract_strided_slice %7 {offsets = [0, 256], sizes = [16, 128], strides = [1, 1]} : vector<16x640xf32> to vector<16x128xf32>
    %27 = vector.extract_strided_slice %7 {offsets = [0, 384], sizes = [16, 128], strides = [1, 1]} : vector<16x640xf32> to vector<16x128xf32>
    %28 = vector.extract_strided_slice %7 {offsets = [0, 512], sizes = [16, 128], strides = [1, 1]} : vector<16x640xf32> to vector<16x128xf32>
    %29 = arith.maximumf %25, %26 : vector<16x128xf32>
    %30 = arith.maximumf %29, %27 : vector<16x128xf32>
    %31 = arith.maximumf %30, %28 : vector<16x128xf32>
    %32 = arith.subf %25, %31 : vector<16x128xf32>
    %33 = math.exp %32 : vector<16x128xf32>
    %34 = arith.subf %26, %31 : vector<16x128xf32>
    %35 = math.exp %34 : vector<16x128xf32>
    %36 = arith.subf %27, %31 : vector<16x128xf32>
    %37 = math.exp %36 : vector<16x128xf32>
    %38 = arith.subf %28, %31 : vector<16x128xf32>
    %39 = math.exp %38 : vector<16x128xf32>
    %40 = arith.addf %33, %35 : vector<16x128xf32>
    %41 = arith.addf %40, %37 : vector<16x128xf32>
    %42 = arith.addf %41, %39 : vector<16x128xf32>
    %43 = tpu.reciprocal %42 {approx = true} : vector<16x128xf32> -> vector<16x128xf32>
    %44 = arith.mulf %33, %43 : vector<16x128xf32>
    %c0_11 = arith.constant 0 : index
    %c0_12 = arith.constant 0 : index
    %45 = vector.load %arg5[%c0_11, %c0_12] : memref<16x512xf32, #tpu.memory_space<vmem>>, vector<16x128xf32>
    tpu.vector_store %arg5[%c0_11, %c0_12], %44 {strides = array<i32>} : memref<16x512xf32, #tpu.memory_space<vmem>>, vector<16x128xf32>,
    %46 = arith.mulf %35, %43 : vector<16x128xf32>
    %c0_13 = arith.constant 0 : index
    %c128 = arith.constant 128 : index
    %47 = vector.load %arg5[%c0_13, %c128] : memref<16x512xf32, #tpu.memory_space<vmem>>, vector<16x128xf32>
    tpu.vector_store %arg5[%c0_13, %c128], %46 {strides = array<i32>} : memref<16x512xf32, #tpu.memory_space<vmem>>, vector<16x128xf32>,
    %48 = arith.mulf %37, %43 : vector<16x128xf32>
    %c0_14 = arith.constant 0 : index
    %c256 = arith.constant 256 : index
    %49 = vector.load %arg5[%c0_14, %c256] : memref<16x512xf32, #tpu.memory_space<vmem>>, vector<16x128xf32>
    tpu.vector_store %arg5[%c0_14, %c256], %48 {strides = array<i32>} : memref<16x512xf32, #tpu.memory_space<vmem>>, vector<16x128xf32>,
    %50 = arith.mulf %39, %43 : vector<16x128xf32>
    %c0_15 = arith.constant 0 : index
    %c384 = arith.constant 384 : index
    %51 = vector.load %arg5[%c0_15, %c384] : memref<16x512xf32, #tpu.memory_space<vmem>>, vector<16x128xf32>
    tpu.vector_store %arg5[%c0_15, %c384], %50 {strides = array<i32>} : memref<16x512xf32, #tpu.memory_space<vmem>>, vector<16x128xf32>,
    return
  }
  func.func @transform_0(%arg0: i32) -> (i32, i32) {
    %c0_i32 = arith.constant 0 : i32
    %c0_i32_0 = arith.constant 0 : i32
    return %arg0, %c0_i32 : i32, i32
  }
  func.func @transform_1(%arg0: i32) -> (i32, i32) {
    %c0_i32 = arith.constant 0 : i32
    %c0_i32_0 = arith.constant 0 : i32
    %c0_i32_1 = arith.constant 0 : i32
    return %c0_i32, %c0_i32_0 : i32, i32
  }
  func.func @transform_2(%arg0: i32) -> (i32, i32) {
    %c0_i32 = arith.constant 0 : i32
    %c0_i32_0 = arith.constant 0 : i32
    %c0_i32_1 = arith.constant 0 : i32
    return %c0_i32, %c0_i32_0 : i32, i32
  }
  func.func @transform_3(%arg0: i32) -> (i32, i32) {
    %c0_i32 = arith.constant 0 : i32
    %c0_i32_0 = arith.constant 0 : i32
    return %arg0, %c0_i32 : i32, i32
  }
  func.func @transform_4(%arg0: i32) -> (i32, i32) {
    %c0_i32 = arith.constant 0 : i32
    %c0_i32_0 = arith.constant 0 : i32
    return %arg0, %c0_i32 : i32, i32
  }
}

</mosaic_0001>

<bundles_post_ra>
// kernel: tpu_custom_call.1
= control target key start
LH: loop header
LB: loop body
LE: loop exit
PB: predicated region body
PF: predicated region fallthrough
CT: control target
= control target key end

     0   :  { %10 = vsyncpa [#allocation3], 0  ;;  %s633_s0 = inlined_call_operand.hbm [shape: bf16[16,32], index: 0, kind: input, shape index: {}]   ;;  %s634_s1 = inlined_call_operand.hbm [shape: bf16[32,640], index: 1, kind: input, shape index: {}]   ;;  %s635_s2 = inlined_call_operand.hbm [shape: f32[1,640], index: 2, kind: input, shape index: {}]   ;;  %s636_s3 = inlined_call_operand.hbm [shape: f32[16,128], index: 3, kind: output, shape index: {0}]   ;;  %s637_s4 = inlined_call_operand.hbm [shape: f32[16,512], index: 4, kind: output, shape index: {1}]  }
   0x1   :  { %11 = vsyncpa [#allocation6], 0 }
   0x2   :  { %12 = vsyncpa [#allocation4], 0  ;;  %s31_s17 = sshll.u32 %s634_s1, 4  ;;  %s32_s17 = int_to_ptr.hbm [resolvable:$true] %s31_s17 }
   0x3   :  { %13 = vsyncpa [#allocation10], 0  ;;  %s567_s18 = smov [#allocation5]   ;;  %s18_s22 = sshll.u32 %s633_s0, 4  ;;  %s19_s22 = int_to_ptr.hbm [resolvable:$true] %s18_s22 }
   0x4   :  { %s33_s19 = sshll.u32 %s567_s18, 4  ;;  %s568_s23 = smov 320   ;;  %s34_s19 = int_to_ptr.vmem [resolvable:$true] %s33_s19 }
   0x5   :  { %s569_s24 = smov 20   ;;  %s570_s25 = smov [#allocation2]  }
   0x6   :  { %39 = dma.hbm_to_vmem [thread:$0]  %s32_s17, 1280, %s34_s19, [#allocation6], %s568_s23, %s568_s23, %s569_s24  }
   0x7   :  { %s20_s26 = sshll.u32 %s570_s25, 4  ;;  %s571_s27 = smov 64   ;;  %s21_s26 = int_to_ptr.vmem [resolvable:$true] %s20_s26 }
   0x8   :  { %s572_s28 = smov 4   ;;  %s45_s30 = sshll.u32 %s635_s2, 4  ;;  %s46_s30 = int_to_ptr.hbm [resolvable:$true] %s45_s30 }
   0x9   :  { %26 = dma.hbm_to_vmem [thread:$0]  %s19_s22, 128, %s21_s26, [#allocation3], %s571_s27, %s571_s27, %s572_s28  }
   0xa   :  { %s573_s5 = smov [#allocation7]  }
   0xb   :  { %s47_s6 = sshll.u32 %s573_s5, 4  ;;  %s48_s6 = int_to_ptr.vmem [resolvable:$true] %s47_s6 }
   0xc   :  { %50 = dma.hbm_to_vmem [thread:$0]  %s46_s30, 80, %s48_s6, [#allocation6]  }
   0xd   :  { %559 = dma.done.wait [#allocation3], 128  }
   0xe   :  { %560 = vsyncadd [#allocation3], 4294967168 }
   0xf   :  { %561 = dma.done.wait [#allocation6], 1360  }
  0x10   :  { %562 = vsyncadd [#allocation6], 4294965936  ;;  %v364_v0 = vld [vmem:[#allocation5 + $0x28] sm:$0xf]  ;;  %v395_v1 = vld [vmem:[#allocation5 + $0x38] sm:$0xf0]  ;;  %v221_v31 = vlaneseq }
  0x11   :  { %v344_v2 = vld [vmem:[#allocation5] sm:$0xf]  ;;  %v365_v3 = vor.u32 %v395_v1, %v364_v0  ;;  %v390_v4 = vld [vmem:[#allocation5 + $0x10] sm:$0xf0]  ;;  %v387_v6 = vld [vmem:[#allocation2] sm:$0xff]  ;;  %vm147_vm0 = vcmask 261120  }
  0x12   :  { %v345_v5 = vor.u32 %v390_v4, %v344_v2  ;;  %v372_v7 = vld [vmem:[#allocation5 + $0x30] sm:$0xf]  ;;  %v396_v8 = vld [vmem:[#allocation5 + $0x40] sm:$0xf0]  ;;  %v394_v9 = vld [vmem:[#allocation5 + $0x34] sm:$0xf] }
  0x13   :  { %157 = vmatpush.bf16.msra.mxu0 %v365_v3  ;;  %v373_v10 = vor.u32 %v396_v8, %v372_v7  ;;  %v374_v11 = vld [vmem:[#allocation5 + $0x44] sm:$0xf0]  ;;  %v391_v13 = vld [vmem:[#allocation5 + $0x18] sm:$0xf0]  ;;  %v393_v15 = vld [vmem:[#allocation5 + $0x2c] sm:$0xf] }
  0x14   :  { %v352_v12 = vld [vmem:[#allocation5 + $0x8] sm:$0xf]  ;;  %v377_v14 = vor.u32 %v394_v9, %v374_v11  ;;  %v366_v16 = vld [vmem:[#allocation5 + $0x3c] sm:$0xf0]  ;;  %v389_v17 = vld [vmem:[#allocation5 + $0xc] sm:$0xf] }
  0x15   :  { %185 = vmatpush.bf16.msra.mxu2 %v373_v10  ;;  %v353_v18 = vor.u32 %v391_v13, %v352_v12  ;;  %v369_v19 = vor.u32 %v393_v15, %v366_v16  ;;  %v354_v20 = vld [vmem:[#allocation5 + $0x1c] sm:$0xf0]  ;;  %v388_v21 = vld [vmem:[#allocation5 + $0x4] sm:$0xf]  ;;  %v346_v22 = vld [vmem:[#allocation5 + $0x14] sm:$0xf0] }
  0x16   :  { %199 = vmatpush.bf16.msra.mxu3 %v377_v14  ;;  %v357_v23 = vor.u32 %v389_v17, %v354_v20  ;;  %v380_v24 = vld [vmem:[#allocation5 + $0x38] sm:$0xf]  ;;  %v397_v25 = vld [vmem:[#allocation5 + $0x48] sm:$0xf0]  ;;  %v360_v26 = vld [vmem:[#allocation5 + $0x10] sm:$0xf]  ;;  %v349_v27 = vor.u32 %v388_v21, %v346_v22 }
  0x17   :  { %158 = vmatpush.bf16.msra.mxu0 %v345_v5  ;;  %171 = vmatpush.bf16.msra.mxu1 %v369_v19  ;;  %v381_v28 = vor.u32 %v397_v25, %v380_v24  ;;  %v392_v29 = vld [vmem:[#allocation5 + $0x20] sm:$0xf0]  ;;  %v78_v32 = vld [vmem:[#allocation7] sm:$0x1f]  ;;  %v222_v33 = vand.u32 127, %v221_v31  ;;  %s574_s0 = smov [#allocation9]  }
  0x18   :  { %v361_v30 = vor.u32 %v392_v29, %v360_v26  ;;  %v80_v34 = vperm.slane %v78_v32, 0  ;;  %v81_v41 = vperm.slane %v78_v32, 1  ;;  %v82_v43 = vperm.slane %v78_v32, 2  ;;  %s317_s2 = sshll.u32 %s574_s0, 4  ;;  %s319_s9 = sshll.u32 %s637_s4, 4  ;;  %s318_s2 = int_to_ptr.vmem [resolvable:$true] %s317_s2  ;;  %s320_s9 = int_to_ptr.hbm [resolvable:$true] %s319_s9 }
  0x19   :  { %186 = vmatpush.bf16.msra.mxu2 %v353_v18  ;;  %vm223_vm1 = vcmp.lt.s32.totalorder %v222_v33, 8  ;;  %v83_v45 = vperm.slane %v78_v32, 3  ;;  %v84_v48 = vperm.slane %v78_v32, 4  ;;  %s575_s10 = smov 512   ;;  %s576_s11 = smov 32  }
  0x1a   :  { %382 = vmatmul.msk.bf16.vlgmr.msra.gmra.mxu0 %vm147_vm0, %v387_v6  ;;  %200 = vmatpush.bf16.msra.mxu3 %v357_v23  ;;  %s577_s4 = smov [#allocation8]   ;;  %s306_s15 = sshll.u32 %s636_s3, 4  ;;  %s307_s15 = int_to_ptr.hbm [resolvable:$true] %s306_s15 }
  0x1b   :  { %213 = vmatpush.bf16.msrb.mxu0 %v381_v28  ;;  %172 = vmatpush.bf16.msra.mxu1 %v349_v27  ;;  %s304_s12 = sshll.u32 %s577_s4, 4  ;;  %s578_s16 = smov 128   ;;  %s305_s12 = int_to_ptr.vmem [resolvable:$true] %s304_s12 }
  0x1c   :  { %384 = vmatmul.msk.bf16.vlgmr.msra.gmra.mxu2 %vm147_vm0, %v387_v6  ;;  %s579_s17 = smov 8  }
  0x1d   :  { %385 = vmatmul.msk.bf16.vlgmr.msra.gmra.mxu3 %vm147_vm0, %v387_v6 }
  0x1e   :  { %383 = vmatmul.msk.bf16.vlgmr.msra.gmra.mxu1 %vm147_vm0, %v387_v6 }
  0x1f   :  { %214 = vmatpush.bf16.msrb.mxu0 %v361_v30 }
  0x2a   :  { %386 = vmatmul.msk.bf16.vlgmr.msrb.gmra.mxu0 %vm147_vm0, %v387_v6 }
  0x97   :  { %v160_v35 = vpop.f32.mrf.mxu0 }
  0x98   :  { %v161_v36 = vadd.f32 %v160_v35, %v80_v34 }
  0x9a   :  { %v224_v37 = vsel %vm223_vm1, %v161_v36, -inf }
  0x9b   :  { %226 = vmax.xlane.f32.xlu0 %v224_v37  ;;  %v174_v42 = vpop.f32.mrf.mxu1 }
  0x9c   :  { %v175_v47 = vadd.f32 %v174_v42, %v81_v41 }
  0x9f   :  { %v162_v38 = vpop.f32.mrf.mxu0  ;;  %v188_v50 = vpop.f32.mrf.mxu2 }
  0xa0   :  { %v163_v39 = vadd.f32 %v162_v38, %v80_v34  ;;  %v189_v52 = vadd.f32 %v188_v50, %v82_v43  ;;  %v202_v53 = vpop.f32.mrf.mxu3 }
  0xa1   :  { %v203_v54 = vadd.f32 %v202_v53, %v83_v45 }
  0xa2   :  { %v225_v40 = vsel %vm223_vm1, %v163_v39, -inf  ;;  %v246_v55 = vmax.f32 %v175_v47, %v189_v52 }
  0xa3   :  { %228 = vmax.xlane.f32.xlu0 %v225_v40  ;;  %v176_v61 = vpop.f32.mrf.mxu1 }
  0xa4   :  { %v248_v57 = vmax.f32 %v246_v55, %v203_v54  ;;  %v177_v62 = vadd.f32 %v176_v61, %v81_v41 }
  0xa7   :  { %v216_v49 = vpop.f32.mrf.mxu0  ;;  %v190_v63 = vpop.f32.mrf.mxu2 }
  0xa8   :  { %v217_v56 = vadd.f32 %v216_v49, %v84_v48  ;;  %v204_v5 = vpop.f32.mrf.mxu3  ;;  %v191_v8 = vadd.f32 %v190_v63, %v82_v43 }
  0xa9   :  { %v205_v9 = vadd.f32 %v204_v5, %v83_v45 }
  0xaa   :  { %v250_v60 = vmax.f32 %v248_v57, %v217_v56  ;;  %v247_v14 = vmax.f32 %v177_v62, %v191_v8 }
  0xac   :  { %v252_v2 = vsub.f32 %v175_v47, %v250_v60  ;;  %v258_v3 = vsub.f32 %v189_v52, %v250_v60  ;;  %v264_v4 = vsub.f32 %v203_v54, %v250_v60  ;;  %v270_v7 = vsub.f32 %v217_v56, %v250_v60 }
  0xad   :  { %v249_v16 = vmax.f32 %v247_v14, %v205_v9 }
  0xae   :  { %v254_v10 = vmul.f32 1.442695, %v252_v2  ;;  %v260_v11 = vmul.f32 1.442695, %v258_v3  ;;  %v266_v12 = vmul.f32 1.442695, %v264_v4 }
  0xaf   :  { %v218_v6 = vpop.f32.mrf.mxu0  ;;  %v272_v13 = vmul.f32 1.442695, %v270_v7 }
  0xb0   :  { %v219_v15 = vadd.f32 %v218_v6, %v84_v48 }
  0xb2   :  { %v251_v17 = vmax.f32 %v249_v16, %v219_v15 }
  0xb4   :  { %v253_v19 = vsub.f32 %v177_v62, %v251_v17  ;;  %v259_v20 = vsub.f32 %v191_v8, %v251_v17  ;;  %v265_v21 = vsub.f32 %v205_v9, %v251_v17  ;;  %v271_v22 = vsub.f32 %v219_v15, %v251_v17 }
  0xb6   :  { %v256_v25 = vmul.f32 1.442695, %v253_v19  ;;  %v262_v26 = vmul.f32 1.442695, %v259_v20  ;;  %v268_v27 = vmul.f32 1.442695, %v265_v21 }
  0xb7   :  { %v274_v31 = vmul.f32 1.442695, %v271_v22 }
 0x10e   :  { %v227_v44 = vpop.xlane.xlu0 %226 }
 0x10f   :  { %v230_v46 = vsub.f32 %v224_v37, %v227_v44 }
 0x111   :  { %v232_v51 = vmul.f32 1.442695, %v230_v46 }
 0x113   :  { %411 = vpow2.f32 %v232_v51 }
 0x116   :  { %v229_v58 = vpop.xlane.xlu0 %228 }
 0x117   :  { %v231_v59 = vsub.f32 %v225_v40, %v229_v58 }
 0x119   :  { %v619_v0 = vpop.eup %411  ;;  %v234_v1 = vmul.f32 1.442695, %v231_v59 }
 0x11a   :  { %236 = vadd.xlane.f32.xlu1 %v619_v0 }
 0x11b   :  { %413 = vpow2.f32 %v234_v1 }
 0x11c   :  { %415 = vpow2.f32 %v254_v10 }
 0x11d   :  { %417 = vpow2.f32 %v260_v11 }
 0x11e   :  { %419 = vpow2.f32 %v266_v12 }
 0x11f   :  { %421 = vpow2.f32 %v272_v13 }
 0x120   :  { %423 = vpow2.f32 %v256_v25 }
 0x121   :  { %v622_v18 = vpop.eup %413  ;;  %425 = vpow2.f32 %v262_v26 }
 0x122   :  { %238 = vadd.xlane.f32.xlu1 %v622_v18  ;;  %v416_v23 = vpop.eup %415  ;;  %427 = vpow2.f32 %v268_v27 }
 0x123   :  { %v418_v24 = vpop.eup %417  ;;  %429 = vpow2.f32 %v274_v31 }
 0x124   :  { %v420_v28 = vpop.eup %419  ;;  %v276_v29 = vadd.f32 %v418_v24, %v416_v23 }
 0x125   :  { %v422_v30 = vpop.eup %421 }
 0x126   :  { %v278_v32 = vadd.f32 %v420_v28, %v276_v29  ;;  %v424_v34 = vpop.eup %423 }
 0x127   :  { %v426_v35 = vpop.eup %425 }
 0x128   :  { %v280_v33 = vadd.f32 %v422_v30, %v278_v32  ;;  %v428_v36 = vpop.eup %427  ;;  %v277_v37 = vadd.f32 %v426_v35, %v424_v34 }
 0x129   :  { %v430_v38 = vpop.eup %429 }
 0x12a   :  { %431 = vrcp.f32 %v280_v33  ;;  %v279_v39 = vadd.f32 %v428_v36, %v277_v37 }
 0x12c   :  { %v281_v45 = vadd.f32 %v430_v38, %v279_v39 }
 0x12e   :  { %433 = vrcp.f32 %v281_v45 }
 0x130   :  { %v432_v40 = vpop.eup %431 }
 0x131   :  { %v284_v41 = vmul.f32 %v432_v40, %v416_v23  ;;  %v288_v42 = vmul.f32 %v432_v40, %v418_v24  ;;  %v292_v43 = vmul.f32 %v432_v40, %v420_v28  ;;  %v296_v44 = vmul.f32 %v432_v40, %v422_v30 }
 0x133   :  { %286 = vst [vmem:[#allocation9] sm:$0xff] %v284_v41 }
 0x134   :  { %290 = vst [vmem:[#allocation9 + $0x8] sm:$0xff] %v288_v42  ;;  %v434_v46 = vpop.eup %433 }
 0x135   :  { %294 = vst [vmem:[#allocation9 + $0x10] sm:$0xff] %v292_v43  ;;  %v285_v47 = vmul.f32 %v434_v46, %v424_v34  ;;  %v289_v48 = vmul.f32 %v434_v46, %v426_v35  ;;  %v293_v49 = vmul.f32 %v434_v46, %v428_v36  ;;  %v297_v50 = vmul.f32 %v434_v46, %v430_v38 }
 0x136   :  { %298 = vst [vmem:[#allocation9 + $0x18] sm:$0xff] %v296_v44 }
 0x137   :  { %287 = vst [vmem:[#allocation9 + $0x20] sm:$0xff] %v285_v47 }
 0x138   :  { %291 = vst [vmem:[#allocation9 + $0x28] sm:$0xff] %v289_v48 }
 0x139   :  { %295 = vst [vmem:[#allocation9 + $0x30] sm:$0xff] %v293_v49 }
 0x13a   :  { %299 = vst [vmem:[#allocation9 + $0x38] sm:$0xff] %v297_v50 }
 0x13b   :  { %325 = dma.vmem_to_hbm [thread:$0]  %s318_s2, 1024, %s320_s9, [#allocation10], %s575_s10, %s575_s10, %s576_s11  }
 0x18d   :  { %v237_v51 = vpop.xlane.xlu1 %236 }
 0x18e   :  { %435 = vrcp.f32 %v237_v51 }
 0x194   :  { %v436_v52 = vpop.eup %435 }
 0x195   :  { %v242_v53 = vmul.f32 %v436_v52, %v619_v0  ;;  %v239_v54 = vpop.xlane.xlu1 %238 }
 0x196   :  { %437 = vrcp.f32 %v239_v54 }
 0x197   :  { %244 = vst [vmem:[#allocation8] sm:$0xff] %v242_v53 }
 0x19c   :  { %v438_v55 = vpop.eup %437 }
 0x19d   :  { %v243_v56 = vmul.f32 %v438_v55, %v622_v18 }
 0x19f   :  { %245 = vst [vmem:[#allocation8 + $0x8] sm:$0xff] %v243_v56 }
 0x1a0   :  { %312 = dma.vmem_to_hbm [thread:$0]  %s305_s12, 256, %s307_s15, [#allocation4], %s578_s16, %s578_s16, %s579_s17  }
 0x1a1   :  { %563 = dma.done.wait [#allocation4], 256  }
 0x1a2   :  { %564 = vsyncadd [#allocation4], 4294967040 }
 0x1a3   :  { %565 = dma.done.wait [#allocation10], 1024  }
 0x1a4   :  { %566 = vsyncadd [#allocation10], 4294966272 }
 0x1a5   :  { %334 = vsyncpa [#allocation3], 1 }
 0x1a6   :  { %335 = vsyncpa [#allocation6], 1 }
 0x1a7   :  { %336 = vsyncpa [#allocation4], 1 }
 0x1a8   :  { %337 = vsyncpa [#allocation10], 1 }

// kernel: tpu_custom_call.1
= control target key start
LH: loop header
LB: loop body
LE: loop exit
PB: predicated region body
PF: predicated region fallthrough
CT: control target
= control target key end

     0   :  { %10 = vsyncpa [#allocation3], 0  ;;  %s633_s0 = inlined_call_operand.hbm [shape: bf16[16,32], index: 0, kind: input, shape index: {}]   ;;  %s634_s1 = inlined_call_operand.hbm [shape: bf16[32,640], index: 1, kind: input, shape index: {}]   ;;  %s635_s2 = inlined_call_operand.hbm [shape: f32[1,640], index: 2, kind: input, shape index: {}]   ;;  %s636_s3 = inlined_call_operand.hbm [shape: f32[16,128], index: 3, kind: output, shape index: {0}]   ;;  %s637_s4 = inlined_call_operand.hbm [shape: f32[16,512], index: 4, kind: output, shape index: {1}]  }
   0x1   :  { %11 = vsyncpa [#allocation6], 0 }
   0x2   :  { %12 = vsyncpa [#allocation4], 0  ;;  %s31_s17 = sshll.u32 %s634_s1, 4  ;;  %s32_s17 = int_to_ptr.hbm [resolvable:$true] %s31_s17 }
   0x3   :  { %13 = vsyncpa [#allocation10], 0  ;;  %s567_s18 = smov [#allocation5]   ;;  %s18_s22 = sshll.u32 %s633_s0, 4  ;;  %s19_s22 = int_to_ptr.hbm [resolvable:$true] %s18_s22 }
   0x4   :  { %s33_s19 = sshll.u32 %s567_s18, 4  ;;  %s568_s23 = smov 320   ;;  %s34_s19 = int_to_ptr.vmem [resolvable:$true] %s33_s19 }
   0x5   :  { %s569_s24 = smov 20   ;;  %s570_s25 = smov [#allocation2]  }
   0x6   :  { %39 = dma.hbm_to_vmem [thread:$0]  %s32_s17, 1280, %s34_s19, [#allocation6], %s568_s23, %s568_s23, %s569_s24  }
   0x7   :  { %s20_s26 = sshll.u32 %s570_s25, 4  ;;  %s571_s27 = smov 64   ;;  %s21_s26 = int_to_ptr.vmem [resolvable:$true] %s20_s26 }
   0x8   :  { %s572_s28 = smov 4   ;;  %s45_s30 = sshll.u32 %s635_s2, 4  ;;  %s46_s30 = int_to_ptr.hbm [resolvable:$true] %s45_s30 }
   0x9   :  { %26 = dma.hbm_to_vmem [thread:$0]  %s19_s22, 128, %s21_s26, [#allocation3], %s571_s27, %s571_s27, %s572_s28  }
   0xa   :  { %s573_s5 = smov [#allocation7]  }
   0xb   :  { %s47_s6 = sshll.u32 %s573_s5, 4  ;;  %s48_s6 = int_to_ptr.vmem [resolvable:$true] %s47_s6 }
   0xc   :  { %50 = dma.hbm_to_vmem [thread:$0]  %s46_s30, 80, %s48_s6, [#allocation6]  }
   0xd   :  { %559 = dma.done.wait [#allocation3], 128  }
   0xe   :  { %560 = vsyncadd [#allocation3], 4294967168 }
   0xf   :  { %561 = dma.done.wait [#allocation6], 1360  }
  0x10   :  { %562 = vsyncadd [#allocation6], 4294965936  ;;  %v364_v0 = vld [vmem:[#allocation5 + $0x28] sm:$0xf]  ;;  %v395_v1 = vld [vmem:[#allocation5 + $0x38] sm:$0xf0]  ;;  %v221_v31 = vlaneseq }
  0x11   :  { %v344_v2 = vld [vmem:[#allocation5] sm:$0xf]  ;;  %v365_v3 = vor.u32 %v395_v1, %v364_v0  ;;  %v390_v4 = vld [vmem:[#allocation5 + $0x10] sm:$0xf0]  ;;  %v387_v6 = vld [vmem:[#allocation2] sm:$0xff]  ;;  %vm147_vm0 = vcmask 261120  }
  0x12   :  { %v345_v5 = vor.u32 %v390_v4, %v344_v2  ;;  %v372_v7 = vld [vmem:[#allocation5 + $0x30] sm:$0xf]  ;;  %v396_v8 = vld [vmem:[#allocation5 + $0x40] sm:$0xf0]  ;;  %v394_v9 = vld [vmem:[#allocation5 + $0x34] sm:$0xf] }
  0x13   :  { %157 = vmatpush.bf16.msra.mxu0 %v365_v3  ;;  %v373_v10 = vor.u32 %v396_v8, %v372_v7  ;;  %v374_v11 = vld [vmem:[#allocation5 + $0x44] sm:$0xf0]  ;;  %v391_v13 = vld [vmem:[#allocation5 + $0x18] sm:$0xf0]  ;;  %v393_v15 = vld [vmem:[#allocation5 + $0x2c] sm:$0xf] }
  0x14   :  { %v352_v12 = vld [vmem:[#allocation5 + $0x8] sm:$0xf]  ;;  %v377_v14 = vor.u32 %v394_v9, %v374_v11  ;;  %v366_v16 = vld [vmem:[#allocation5 + $0x3c] sm:$0xf0]  ;;  %v389_v17 = vld [vmem:[#allocation5 + $0xc] sm:$0xf] }
  0x15   :  { %185 = vmatpush.bf16.msra.mxu2 %v373_v10  ;;  %v353_v18 = vor.u32 %v391_v13, %v352_v12  ;;  %v369_v19 = vor.u32 %v393_v15, %v366_v16  ;;  %v354_v20 = vld [vmem:[#allocation5 + $0x1c] sm:$0xf0]  ;;  %v388_v21 = vld [vmem:[#allocation5 + $0x4] sm:$0xf]  ;;  %v346_v22 = vld [vmem:[#allocation5 + $0x14] sm:$0xf0] }
  0x16   :  { %199 = vmatpush.bf16.msra.mxu3 %v377_v14  ;;  %v357_v23 = vor.u32 %v389_v17, %v354_v20  ;;  %v380_v24 = vld [vmem:[#allocation5 + $0x38] sm:$0xf]  ;;  %v397_v25 = vld [vmem:[#allocation5 + $0x48] sm:$0xf0]  ;;  %v360_v26 = vld [vmem:[#allocation5 + $0x10] sm:$0xf]  ;;  %v349_v27 = vor.u32 %v388_v21, %v346_v22 }
  0x17   :  { %158 = vmatpush.bf16.msra.mxu0 %v345_v5  ;;  %171 = vmatpush.bf16.msra.mxu1 %v369_v19  ;;  %v381_v28 = vor.u32 %v397_v25, %v380_v24  ;;  %v392_v29 = vld [vmem:[#allocation5 + $0x20] sm:$0xf0]  ;;  %v78_v32 = vld [vmem:[#allocation7] sm:$0x1f]  ;;  %v222_v33 = vand.u32 127, %v221_v31  ;;  %s574_s0 = smov [#allocation9]  }
  0x18   :  { %v361_v30 = vor.u32 %v392_v29, %v360_v26  ;;  %v80_v34 = vperm.slane %v78_v32, 0  ;;  %v81_v41 = vperm.slane %v78_v32, 1  ;;  %v82_v43 = vperm.slane %v78_v32, 2  ;;  %s317_s2 = sshll.u32 %s574_s0, 4  ;;  %s319_s9 = sshll.u32 %s637_s4, 4  ;;  %s318_s2 = int_to_ptr.vmem [resolvable:$true] %s317_s2  ;;  %s320_s9 = int_to_ptr.hbm [resolvable:$true] %s319_s9 }
  0x19   :  { %186 = vmatpush.bf16.msra.mxu2 %v353_v18  ;;  %vm223_vm1 = vcmp.lt.s32.totalorder %v222_v33, 8  ;;  %v83_v45 = vperm.slane %v78_v32, 3  ;;  %v84_v48 = vperm.slane %v78_v32, 4  ;;  %s575_s10 = smov 512   ;;  %s576_s11 = smov 32  }
  0x1a   :  { %382 = vmatmul.msk.bf16.vlgmr.msra.gmra.mxu0 %vm147_vm0, %v387_v6  ;;  %200 = vmatpush.bf16.msra.mxu3 %v357_v23  ;;  %s577_s4 = smov [#allocation8]   ;;  %s306_s15 = sshll.u32 %s636_s3, 4  ;;  %s307_s15 = int_to_ptr.hbm [resolvable:$true] %s306_s15 }
  0x1b   :  { %213 = vmatpush.bf16.msrb.mxu0 %v381_v28  ;;  %172 = vmatpush.bf16.msra.mxu1 %v349_v27  ;;  %s304_s12 = sshll.u32 %s577_s4, 4  ;;  %s578_s16 = smov 128   ;;  %s305_s12 = int_to_ptr.vmem [resolvable:$true] %s304_s12 }
  0x1c   :  { %384 = vmatmul.msk.bf16.vlgmr.msra.gmra.mxu2 %vm147_vm0, %v387_v6  ;;  %s579_s17 = smov 8  }
  0x1d   :  { %385 = vmatmul.msk.bf16.vlgmr.msra.gmra.mxu3 %vm147_vm0, %v387_v6 }
  0x1e   :  { %383 = vmatmul.msk.bf16.vlgmr.msra.gmra.mxu1 %vm147_vm0, %v387_v6 }
  0x1f   :  { %214 = vmatpush.bf16.msrb.mxu0 %v361_v30 }
  0x2a   :  { %386 = vmatmul.msk.bf16.vlgmr.msrb.gmra.mxu0 %vm147_vm0, %v387_v6 }
  0x97   :  { %v160_v35 = vpop.f32.mrf.mxu0 }
  0x98   :  { %v161_v36 = vadd.f32 %v160_v35, %v80_v34 }
  0x9a   :  { %v224_v37 = vsel %vm223_vm1, %v161_v36, -inf }
  0x9b   :  { %226 = vmax.xlane.f32.xlu0 %v224_v37  ;;  %v174_v42 = vpop.f32.mrf.mxu1 }
  0x9c   :  { %v175_v47 = vadd.f32 %v174_v42, %v81_v41 }
  0x9f   :  { %v162_v38 = vpop.f32.mrf.mxu0  ;;  %v188_v50 = vpop.f32.mrf.mxu2 }
  0xa0   :  { %v163_v39 = vadd.f32 %v162_v38, %v80_v34  ;;  %v189_v52 = vadd.f32 %v188_v50, %v82_v43  ;;  %v202_v53 = vpop.f32.mrf.mxu3 }
  0xa1   :  { %v203_v54 = vadd.f32 %v202_v53, %v83_v45 }
  0xa2   :  { %v225_v40 = vsel %vm223_vm1, %v163_v39, -inf  ;;  %v246_v55 = vmax.f32 %v175_v47, %v189_v52 }
  0xa3   :  { %228 = vmax.xlane.f32.xlu0 %v225_v40  ;;  %v176_v61 = vpop.f32.mrf.mxu1 }
  0xa4   :  { %v248_v57 = vmax.f32 %v246_v55, %v203_v54  ;;  %v177_v62 = vadd.f32 %v176_v61, %v81_v41 }
  0xa7   :  { %v216_v49 = vpop.f32.mrf.mxu0  ;;  %v190_v63 = vpop.f32.mrf.mxu2 }
  0xa8   :  { %v217_v56 = vadd.f32 %v216_v49, %v84_v48  ;;  %v204_v5 = vpop.f32.mrf.mxu3  ;;  %v191_v8 = vadd.f32 %v190_v63, %v82_v43 }
  0xa9   :  { %v205_v9 = vadd.f32 %v204_v5, %v83_v45 }
  0xaa   :  { %v250_v60 = vmax.f32 %v248_v57, %v217_v56  ;;  %v247_v14 = vmax.f32 %v177_v62, %v191_v8 }
  0xac   :  { %v252_v2 = vsub.f32 %v175_v47, %v250_v60  ;;  %v258_v3 = vsub.f32 %v189_v52, %v250_v60  ;;  %v264_v4 = vsub.f32 %v203_v54, %v250_v60  ;;  %v270_v7 = vsub.f32 %v217_v56, %v250_v60 }
  0xad   :  { %v249_v16 = vmax.f32 %v247_v14, %v205_v9 }
  0xae   :  { %v254_v10 = vmul.f32 1.442695, %v252_v2  ;;  %v260_v11 = vmul.f32 1.442695, %v258_v3  ;;  %v266_v12 = vmul.f32 1.442695, %v264_v4 }
  0xaf   :  { %v218_v6 = vpop.f32.mrf.mxu0  ;;  %v272_v13 = vmul.f32 1.442695, %v270_v7 }
  0xb0   :  { %v219_v15 = vadd.f32 %v218_v6, %v84_v48 }
  0xb2   :  { %v251_v17 = vmax.f32 %v249_v16, %v219_v15 }
  0xb4   :  { %v253_v19 = vsub.f32 %v177_v62, %v251_v17  ;;  %v259_v20 = vsub.f32 %v191_v8, %v251_v17  ;;  %v265_v21 = vsub.f32 %v205_v9, %v251_v17  ;;  %v271_v22 = vsub.f32 %v219_v15, %v251_v17 }
  0xb6   :  { %v256_v25 = vmul.f32 1.442695, %v253_v19  ;;  %v262_v26 = vmul.f32 1.442695, %v259_v20  ;;  %v268_v27 = vmul.f32 1.442695, %v265_v21 }
  0xb7   :  { %v274_v31 = vmul.f32 1.442695, %v271_v22 }
 0x10e   :  { %v227_v44 = vpop.xlane.xlu0 %226 }
 0x10f   :  { %v230_v46 = vsub.f32 %v224_v37, %v227_v44 }
 0x111   :  { %v232_v51 = vmul.f32 1.442695, %v230_v46 }
 0x113   :  { %411 = vpow2.f32 %v232_v51 }
 0x116   :  { %v229_v58 = vpop.xlane.xlu0 %228 }
 0x117   :  { %v231_v59 = vsub.f32 %v225_v40, %v229_v58 }
 0x119   :  { %v619_v0 = vpop.eup %411  ;;  %v234_v1 = vmul.f32 1.442695, %v231_v59 }
 0x11a   :  { %236 = vadd.xlane.f32.xlu1 %v619_v0 }
 0x11b   :  { %413 = vpow2.f32 %v234_v1 }
 0x11c   :  { %415 = vpow2.f32 %v254_v10 }
 0x11d   :  { %417 = vpow2.f32 %v260_v11 }
 0x11e   :  { %419 = vpow2.f32 %v266_v12 }
 0x11f   :  { %421 = vpow2.f32 %v272_v13 }
 0x120   :  { %423 = vpow2.f32 %v256_v25 }
 0x121   :  { %v622_v18 = vpop.eup %413  ;;  %425 = vpow2.f32 %v262_v26 }
 0x122   :  { %238 = vadd.xlane.f32.xlu1 %v622_v18  ;;  %v416_v23 = vpop.eup %415  ;;  %427 = vpow2.f32 %v268_v27 }
 0x123   :  { %v418_v24 = vpop.eup %417  ;;  %429 = vpow2.f32 %v274_v31 }
 0x124   :  { %v420_v28 = vpop.eup %419  ;;  %v276_v29 = vadd.f32 %v418_v24, %v416_v23 }
 0x125   :  { %v422_v30 = vpop.eup %421 }
 0x126   :  { %v278_v32 = vadd.f32 %v420_v28, %v276_v29  ;;  %v424_v34 = vpop.eup %423 }
 0x127   :  { %v426_v35 = vpop.eup %425 }
 0x128   :  { %v280_v33 = vadd.f32 %v422_v30, %v278_v32  ;;  %v428_v36 = vpop.eup %427  ;;  %v277_v37 = vadd.f32 %v426_v35, %v424_v34 }
 0x129   :  { %v430_v38 = vpop.eup %429 }
 0x12a   :  { %431 = vrcp.f32 %v280_v33  ;;  %v279_v39 = vadd.f32 %v428_v36, %v277_v37 }
 0x12c   :  { %v281_v45 = vadd.f32 %v430_v38, %v279_v39 }
 0x12e   :  { %433 = vrcp.f32 %v281_v45 }
 0x130   :  { %v432_v40 = vpop.eup %431 }
 0x131   :  { %v284_v41 = vmul.f32 %v432_v40, %v416_v23  ;;  %v288_v42 = vmul.f32 %v432_v40, %v418_v24  ;;  %v292_v43 = vmul.f32 %v432_v40, %v420_v28  ;;  %v296_v44 = vmul.f32 %v432_v40, %v422_v30 }
 0x133   :  { %286 = vst [vmem:[#allocation9] sm:$0xff] %v284_v41 }
 0x134   :  { %290 = vst [vmem:[#allocation9 + $0x8] sm:$0xff] %v288_v42  ;;  %v434_v46 = vpop.eup %433 }
 0x135   :  { %294 = vst [vmem:[#allocation9 + $0x10] sm:$0xff] %v292_v43  ;;  %v285_v47 = vmul.f32 %v434_v46, %v424_v34  ;;  %v289_v48 = vmul.f32 %v434_v46, %v426_v35  ;;  %v293_v49 = vmul.f32 %v434_v46, %v428_v36  ;;  %v297_v50 = vmul.f32 %v434_v46, %v430_v38 }
 0x136   :  { %298 = vst [vmem:[#allocation9 + $0x18] sm:$0xff] %v296_v44 }
 0x137   :  { %287 = vst [vmem:[#allocation9 + $0x20] sm:$0xff] %v285_v47 }
 0x138   :  { %291 = vst [vmem:[#allocation9 + $0x28] sm:$0xff] %v289_v48 }
 0x139   :  { %295 = vst [vmem:[#allocation9 + $0x30] sm:$0xff] %v293_v49 }
 0x13a   :  { %299 = vst [vmem:[#allocation9 + $0x38] sm:$0xff] %v297_v50 }
 0x13b   :  { %325 = dma.vmem_to_hbm [thread:$0]  %s318_s2, 1024, %s320_s9, [#allocation10], %s575_s10, %s575_s10, %s576_s11  }
 0x18d   :  { %v237_v51 = vpop.xlane.xlu1 %236 }
 0x18e   :  { %435 = vrcp.f32 %v237_v51 }
 0x194   :  { %v436_v52 = vpop.eup %435 }
 0x195   :  { %v242_v53 = vmul.f32 %v436_v52, %v619_v0  ;;  %v239_v54 = vpop.xlane.xlu1 %238 }
 0x196   :  { %437 = vrcp.f32 %v239_v54 }
 0x197   :  { %244 = vst [vmem:[#allocation8] sm:$0xff] %v242_v53 }
 0x19c   :  { %v438_v55 = vpop.eup %437 }
 0x19d   :  { %v243_v56 = vmul.f32 %v438_v55, %v622_v18 }
 0x19f   :  { %245 = vst [vmem:[#allocation8 + $0x8] sm:$0xff] %v243_v56 }
 0x1a0   :  { %312 = dma.vmem_to_hbm [thread:$0]  %s305_s12, 256, %s307_s15, [#allocation4], %s578_s16, %s578_s16, %s579_s17  }
 0x1a1   :  { %563 = dma.done.wait [#allocation4], 256  }
 0x1a2   :  { %564 = vsyncadd [#allocation4], 4294967040 }
 0x1a3   :  { %565 = dma.done.wait [#allocation10], 1024  }
 0x1a4   :  { %566 = vsyncadd [#allocation10], 4294966272 }
 0x1a5   :  { %334 = vsyncpa [#allocation3], 1 }
 0x1a6   :  { %335 = vsyncpa [#allocation6], 1 }
 0x1a7   :  { %336 = vsyncpa [#allocation4], 1 }
 0x1a8   :  { %337 = vsyncpa [#allocation10], 1 }

</bundles_post_ra>
